<compile_context>
chip_gen: v7x
topology: tpu7x:2x2x1
jax: 0.10.0
libtpu: 0.0.40
codegen_flags: <defaults>
</compile_context>

<pallas_src>
import functools

import jax
import jax.numpy as jnp
from jax import lax
from jax.experimental import pallas as pl
from jax.experimental.pallas import tpu as pltpu


_VMEM_BUDGET_BYTES = 48 * 1024 * 1024   # working-set target (safe on v7x's 64 MiB VMEM)


def _round_up(x, m):
    return ((x + m - 1) // m) * m


def _cdiv(a, b):
    return (a + b - 1) // b


def _pick_hidden_tile(hidden, requested):
    """Largest multiple of 128 that divides `hidden` and is <= requested (else full)."""
    if hidden <= requested or hidden % 128 != 0:
        return hidden
    best = None
    t = 128
    while t <= requested:
        if hidden % t == 0:
            best = t
        t += 128
    return best if best is not None else hidden


def _tile_footprint(tm, tn, dim, isz, osz):
    """VMEM bytes for one pipelined step (double-buffered blocks + f32 accumulator)."""
    return (2 * tm * dim * isz            # x token tile (double-buffered)
            + 2 * tm * dim * osz          # output tile (double-buffered)
            + tm * dim * 4                # f32 accumulator scratch
            + 2 * 3 * tn * dim * isz)     # w1 + w3 + w2 hidden slabs (double-buffered)


def _auto_tiles(M, dim, hidden, tm_req, tn_req, isz, osz):
    """Pick (token_tile, hidden_tile) that balance padding and fit the VMEM budget."""
    tn = _pick_hidden_tile(hidden, tn_req)
    # Balance token tiles so padding is minimal for the requested size.
    tm = min(tm_req, _round_up(M, 16))
    tm = _round_up(_cdiv(M, _cdiv(M, tm)), 16)
    # Shrink until the working set fits (token tile first, then hidden slab).
    while tm > 16 and _tile_footprint(tm, tn, dim, isz, osz) > _VMEM_BUDGET_BYTES:
        tm = _round_up(max(16, tm // 2), 16)
    while tn > 128 and _tile_footprint(tm, tn, dim, isz, osz) > _VMEM_BUDGET_BYTES:
        tn_new = _pick_hidden_tile(hidden, max(128, tn // 2))
        if tn_new >= tn:
            break
        tn = tn_new
    return tm, tn


def _ffn_kernel(x_ref, w1_ref, w3_ref, w2_ref, o_ref, acc_ref):
    """One (token-tile, hidden-tile) step of out = (silu(x@w1.T) * (x@w3.T)) @ w2.T."""
    h = pl.program_id(1)

    @pl.when(h == 0)
    def _():
        acc_ref[...] = jnp.zeros_like(acc_ref)

    # Contract on the LAST axis of both operands: weights stay in PyTorch
    # (out_features, in_features) layout, so no host-side transpose is needed.
    dn = (((1,), (1,)), ((), ()))
    x = x_ref[...]                                                       # (tm, dim) bf16
    h1 = lax.dot_general(x, w1_ref[...], dn,
                         preferred_element_type=jnp.float32)             # (tm, tn) f32
    h3 = lax.dot_general(x, w3_ref[...], dn,
                         preferred_element_type=jnp.float32)             # (tm, tn) f32
    gated = (h1 * jax.nn.sigmoid(h1)) * h3                               # SiLU gate, f32
    acc_ref[...] += lax.dot_general(gated.astype(w2_ref.dtype), w2_ref[...], dn,
                                    preferred_element_type=jnp.float32)  # (tm, dim) f32

    @pl.when(h == pl.num_programs(1) - 1)
    def _():
        o_ref[...] = acc_ref[...].astype(o_ref.dtype)


@functools.partial(jax.jit, static_argnames=("tm", "tn", "compute_dtype"))
def feed_forward(x, w1, w2, w3, *, tm=None, tn=None, compute_dtype=jnp.bfloat16):
    """x: (B, S, dim). w1/w3: (hidden, dim), w2: (dim, hidden) -- PyTorch layout."""
    B, S, dim = x.shape
    hidden = w1.shape[0]
    M = B * S
    out_dtype = x.dtype
    isz = jnp.dtype(compute_dtype).itemsize
    osz = jnp.dtype(out_dtype).itemsize

    tm_req = 512 if tm is None else tm
    tn_req = 512 if tn is None else tn
    tm_eff, tn_eff = _auto_tiles(M, dim, hidden, tm_req, tn_req, isz, osz)

    M_pad = _round_up(M, tm_eff)

    x2d = x.reshape(M, dim).astype(compute_dtype)
    if M_pad != M:
        x2d = jnp.pad(x2d, ((0, M_pad - M), (0, 0)))

    # No transposes: keep (out, in) layout; only a dtype cast (no-op if already bf16).
    w1c = w1.astype(compute_dtype)   # (hidden, dim)
    w3c = w3.astype(compute_dtype)   # (hidden, dim)
    w2c = w2.astype(compute_dtype)   # (dim, hidden)

    grid = (M_pad // tm_eff, hidden // tn_eff)

    footprint = _tile_footprint(tm_eff, tn_eff, dim, isz, osz)
    vmem_limit = min(max(int(footprint * 1.25), 32 * 1024 * 1024), 64 * 1024 * 1024)

    cost = pl.CostEstimate(
        flops=6 * M * dim * hidden,                  # 3 matmuls, 2 flops/MAC
        transcendentals=M * hidden,                  # sigmoid
        bytes_accessed=(M * dim + 3 * dim * hidden) * isz + M * dim * osz,
    )

    out2d = pl.pallas_call(
        _ffn_kernel,
        out_shape=jax.ShapeDtypeStruct((M_pad, dim), out_dtype),
        grid_spec=pltpu.PrefetchScalarGridSpec(
            num_scalar_prefetch=0,
            grid=grid,
            in_specs=[
                pl.BlockSpec((tm_eff, dim), lambda i, h: (i, 0)),   # x token tile
                pl.BlockSpec((tn_eff, dim), lambda i, h: (h, 0)),   # w1 hidden slab
                pl.BlockSpec((tn_eff, dim), lambda i, h: (h, 0)),   # w3 hidden slab
                pl.BlockSpec((dim, tn_eff), lambda i, h: (0, h)),   # w2 hidden slab
            ],
            out_specs=pl.BlockSpec((tm_eff, dim), lambda i, h: (i, 0)),
            scratch_shapes=[pltpu.VMEM((tm_eff, dim), jnp.float32)],
        ),
        compiler_params=pltpu.CompilerParams(
            dimension_semantics=("parallel", "arbitrary"),
            vmem_limit_bytes=vmem_limit,
        ),
        cost_estimate=cost,
    )(x2d, w1c, w3c, w2c)

    if M_pad != M:
        out2d = out2d[:M]
    return out2d.reshape(B, S, dim)


def _llama_hidden_dim(dim, hidden_dim, multiple_of, ffn_dim_multiplier):
    hidden_dim = int(2 * hidden_dim / 3)
    if ffn_dim_multiplier is not None:
        hidden_dim = int(ffn_dim_multiplier * hidden_dim)
    hidden_dim = multiple_of * ((hidden_dim + multiple_of - 1) // multiple_of)
    return hidden_dim


if __name__ == "__main__":
    # Module config (small, TPU-friendly).
    dim = 128
    hidden_dim_arg = 4 * dim          # LLaMA convention: 4*dim passed in
    multiple_of = 128
    ffn_dim_multiplier = None
    hidden = _llama_hidden_dim(dim, hidden_dim_arg, multiple_of, ffn_dim_multiplier)
    # hidden = 128 * ceil((2*512/3)/128) = 384

    B, S = 2, 16                      # M = 32 tokens

    key = jax.random.PRNGKey(0)
    kx, k1, k2, k3 = jax.random.split(key, 4)
    x = jax.random.normal(kx, (B, S, dim), dtype=jnp.float32)
    # Deterministic params, PyTorch (out_features, in_features) layout, bf16 storage.
    scale = 0.02
    w1 = (scale * jax.random.normal(k1, (hidden, dim), jnp.float32)).astype(jnp.bfloat16)
    w2 = (scale * jax.random.normal(k2, (dim, hidden), jnp.float32)).astype(jnp.bfloat16)
    w3 = (scale * jax.random.normal(k3, (hidden, dim), jnp.float32)).astype(jnp.bfloat16)

    # Pure-JAX reference at matching precision (bf16 operands, f32 accumulation).
    xb = x.astype(jnp.bfloat16)
    h1 = jnp.einsum("bsd,hd->bsh", xb, w1, preferred_element_type=jnp.float32)
    h3 = jnp.einsum("bsd,hd->bsh", xb, w3, preferred_element_type=jnp.float32)
    gated = (h1 * jax.nn.sigmoid(h1) * h3).astype(jnp.bfloat16)
    ref = jnp.einsum("bsh,dh->bsd", gated, w2, preferred_element_type=jnp.float32)

    # 1) Small explicit tiles so both grid axes are exercised (grid = (2, 3)).
    out_small = jax.block_until_ready(feed_forward(x, w1, w2, w3, tm=16, tn=128))
    # 2) Auto-tiled path (single token tile, hidden slab = full hidden).
    out_auto = jax.block_until_ready(feed_forward(x, w1, w2, w3))

    assert out_small.shape == (B, S, dim) and out_auto.shape == (B, S, dim)
    for out in (out_small, out_auto):
        assert jnp.allclose(out.astype(jnp.float32), ref, atol=1e-2, rtol=1e-2), \
            "mismatch vs reference"
    print("KERNEL_OK")
</pallas_src>

<mosaic_0001>
module attributes {stable_mosaic.version = 11 : i64} {
  func.func @_ffn_kernel(%arg0: i32, %arg1: i32, %arg2: memref<16x128xbf16, #tpu.memory_space<vmem>>, %arg3: memref<128x128xbf16, #tpu.memory_space<vmem>>, %arg4: memref<128x128xbf16, #tpu.memory_space<vmem>>, %arg5: memref<128x128xbf16, #tpu.memory_space<vmem>>, %arg6: memref<16x128xf32, #tpu.memory_space<vmem>>, %arg7: memref<16x128xf32, #tpu.memory_space<vmem>>) attributes {dimension_semantics = [#tpu.dimension_semantics<parallel>, #tpu.dimension_semantics<arbitrary>], iteration_bounds = array<i64: 2, 3>, scalar_prefetch = 0 : i64, scratch_operands = 1 : i64, tpu.core_type = #tpu.core_type<tc>, window_params = [{transform_indices = @transform_0, window_bounds = array<i64: 16, 128>}, {transform_indices = @transform_1, window_bounds = array<i64: 128, 128>}, {transform_indices = @transform_2, window_bounds = array<i64: 128, 128>}, {transform_indices = @transform_3, window_bounds = array<i64: 128, 128>}, {transform_indices = @transform_4, window_bounds = array<i64: 16, 128>}]} {
    %c0_i32 = arith.constant 0 : i32
    %0 = arith.cmpi eq, %arg1, %c0_i32 : i32
    %1 = arith.extui %0 : i1 to i32
    %c0_i32_0 = arith.constant 0 : i32
    %2 = arith.cmpi ne, %1, %c0_i32_0 : i32
    scf.if %2 {
      %cst_16 = arith.constant 0.000000e+00 : f32
      %24 = vector.broadcast %cst_16 : f32 to vector<16x128xf32>
      %c0_17 = arith.constant 0 : index
      %c0_18 = arith.constant 0 : index
      %25 = vector.load %arg7[%c0_17, %c0_18] : memref<16x128xf32, #tpu.memory_space<vmem>>, vector<16x128xf32>
      tpu.vector_store %arg7[%c0_17, %c0_18], %24 {strides = array<i32>} : memref<16x128xf32, #tpu.memory_space<vmem>>, vector<16x128xf32>,
    } else {
    }
    %c0 = arith.constant 0 : index
    %c0_1 = arith.constant 0 : index
    %3 = vector.load %arg2[%c0, %c0_1] : memref<16x128xbf16, #tpu.memory_space<vmem>>, vector<16x128xbf16>
    %c0_2 = arith.constant 0 : index
    %c0_3 = arith.constant 0 : index
    %4 = vector.load %arg3[%c0_2, %c0_3] : memref<128x128xbf16, #tpu.memory_space<vmem>>, vector<128x128xbf16>
    %cst = arith.constant dense<0.000000e+00> : vector<16x128xf32>
    %5 = tpu.matmul %3, %4, %cst {dimension_numbers = #tpu.dot_dimension_numbers<[1], [1], [0], [0], [0, 0, 1, 0], [], []>} : vector<16x128xbf16>, vector<128x128xbf16>, vector<16x128xf32> -> vector<16x128xf32>
    %c0_4 = arith.constant 0 : index
    %c0_5 = arith.constant 0 : index
    %6 = vector.load %arg4[%c0_4, %c0_5] : memref<128x128xbf16, #tpu.memory_space<vmem>>, vector<128x128xbf16>
    %cst_6 = arith.constant dense<0.000000e+00> : vector<16x128xf32>
    %7 = tpu.matmul %3, %6, %cst_6 {dimension_numbers = #tpu.dot_dimension_numbers<[1], [1], [0], [0], [0, 0, 1, 0], [], []>} : vector<16x128xbf16>, vector<128x128xbf16>, vector<16x128xf32> -> vector<16x128xf32>
    %8 = arith.negf %5 : vector<16x128xf32>
    %9 = math.exp %8 : vector<16x128xf32>
    %cst_7 = arith.constant 1.000000e+00 : f32
    %10 = vector.broadcast %cst_7 : f32 to vector<16x128xf32>
    %11 = arith.addf %10, %9 : vector<16x128xf32>
    %12 = arith.divf %10, %11 : vector<16x128xf32>
    %13 = arith.mulf %5, %12 : vector<16x128xf32>
    %14 = arith.mulf %13, %7 : vector<16x128xf32>
    %c0_8 = arith.constant 0 : index
    %c0_9 = arith.constant 0 : index
    %15 = vector.load %arg7[%c0_8, %c0_9] : memref<16x128xf32, #tpu.memory_space<vmem>>, vector<16x128xf32>
    %16 = arith.truncf %14 : vector<16x128xf32> to vector<16x128xbf16>
    %c0_10 = arith.constant 0 : index
    %c0_11 = arith.constant 0 : index
    %17 = vector.load %arg5[%c0_10, %c0_11] : memref<128x128xbf16, #tpu.memory_space<vmem>>, vector<128x128xbf16>
    %cst_12 = arith.constant dense<0.000000e+00> : vector<16x128xf32>
    %18 = tpu.matmul %16, %17, %cst_12 {dimension_numbers = #tpu.dot_dimension_numbers<[1], [1], [0], [0], [0, 0, 1, 0], [], []>} : vector<16x128xbf16>, vector<128x128xbf16>, vector<16x128xf32> -> vector<16x128xf32>
    %19 = arith.addf %15, %18 : vector<16x128xf32>
    %c0_13 = arith.constant 0 : index
    %c0_14 = arith.constant 0 : index
    %20 = vector.load %arg7[%c0_13, %c0_14] : memref<16x128xf32, #tpu.memory_space<vmem>>, vector<16x128xf32>
    tpu.vector_store %arg7[%c0_13, %c0_14], %19 {strides = array<i32>} : memref<16x128xf32, #tpu.memory_space<vmem>>, vector<16x128xf32>,
    %c2_i32 = arith.constant 2 : i32
    %21 = arith.cmpi eq, %arg1, %c2_i32 : i32
    %22 = arith.extui %21 : i1 to i32
    %c0_i32_15 = arith.constant 0 : i32
    %23 = arith.cmpi ne, %22, %c0_i32_15 : i32
    scf.if %23 {
      %c0_16 = arith.constant 0 : index
      %c0_17 = arith.constant 0 : index
      %24 = vector.load %arg7[%c0_16, %c0_17] : memref<16x128xf32, #tpu.memory_space<vmem>>, vector<16x128xf32>
      %c0_18 = arith.constant 0 : index
      %c0_19 = arith.constant 0 : index
      %25 = vector.load %arg6[%c0_18, %c0_19] : memref<16x128xf32, #tpu.memory_space<vmem>>, vector<16x128xf32>
      tpu.vector_store %arg6[%c0_18, %c0_19], %24 {strides = array<i32>} : memref<16x128xf32, #tpu.memory_space<vmem>>, vector<16x128xf32>,
    } else {
    }
    return
  }
  func.func @transform_0(%arg0: i32, %arg1: i32) -> (i32, i32) {
    %c0_i32 = arith.constant 0 : i32
    %c0_i32_0 = arith.constant 0 : i32
    return %arg0, %c0_i32 : i32, i32
  }
  func.func @transform_1(%arg0: i32, %arg1: i32) -> (i32, i32) {
    %c0_i32 = arith.constant 0 : i32
    %c0_i32_0 = arith.constant 0 : i32
    return %arg1, %c0_i32 : i32, i32
  }
  func.func @transform_2(%arg0: i32, %arg1: i32) -> (i32, i32) {
    %c0_i32 = arith.constant 0 : i32
    %c0_i32_0 = arith.constant 0 : i32
    return %arg1, %c0_i32 : i32, i32
  }
  func.func @transform_3(%arg0: i32, %arg1: i32) -> (i32, i32) {
    %c0_i32 = arith.constant 0 : i32
    %c0_i32_0 = arith.constant 0 : i32
    return %c0_i32, %arg1 : i32, i32
  }
  func.func @transform_4(%arg0: i32, %arg1: i32) -> (i32, i32) {
    %c0_i32 = arith.constant 0 : i32
    %c0_i32_0 = arith.constant 0 : i32
    return %arg0, %c0_i32 : i32, i32
  }
}

</mosaic_0001>

<bundles_post_ra>
// kernel: feed_forward.1
= control target key start
LH: loop header
LB: loop body
LE: loop exit
PB: predicated region body
PF: predicated region fallthrough
CT: control target
= control target key end

     0   :  { %s1791_s0 = inlined_call_operand.vmem [shape: bf16[32,128], index: 0, kind: input, shape index: {}]   ;;  %s1792_s1 = inlined_call_operand.hbm [shape: bf16[384,128], index: 1, kind: input, shape index: {}]   ;;  %s1793_s2 = inlined_call_operand.hbm [shape: bf16[384,128], index: 2, kind: input, shape index: {}]   ;;  %s1794_s3 = inlined_call_operand.hbm [shape: bf16[128,384], index: 3, kind: input, shape index: {}]   ;;  %s1795_s4 = inlined_call_operand.hbm [shape: f32[32,128], index: 4, kind: output, shape index: {}]  }
   0x1   :  { %1813 = sst [smem:[#allocation23_spill]] %s1793_s2 }
   0x2   :  { %9 = vsyncpa [#allocation4], 0 }
   0x3   :  { %11 = vsyncpa [#allocation4 + $0x1], 0 }
   0x4   :  { %12 = vsyncpa [#allocation7], 0 }
   0x5   :  { %14 = vsyncpa [#allocation7 + $0x1], 0 }
   0x6   :  { %15 = vsyncpa [#allocation5], 0 }
   0x7   :  { %17 = vsyncpa [#allocation5 + $0x1], 0  ;;  %s1394_s15 = smov 0   ;;  %s1396_s16 = smov 0  }
   0x8   :  { %s1398_s17 = smov 0   ;;  %s1400_s18 = smov 0  }
   0x9   :  { %s1402_s19 = smov 0   ;;  %s1404_s20 = smov 0  }
   0xa   :  { %s1406_s21 = smov 0   ;;  %s1408_s22 = smov 0  }
   0xb   :  { %s1410_s23 = smov 0   ;;  %s1412_s24 = smov 0  }
   0xc   :  { %s1414_s25 = smov 0  }
   0xd LB: > { %1814 = sst [smem:[#allocation13_spill]] %s1315_s15  ;;  %s1448_s26 = sadd.s32 4294967295, %s1355_s25   ;;  %s1355_s25 = sphi %s1414_s25, %s23_s25   ;;  %s1351_s24 = sphi %s1412_s24, %s1849_s24   ;;  %s1347_s23 = sphi %s1410_s23, %s1848_s23   ;;  %s1343_s22 = sphi %s1408_s22, %s1847_s22   ;;  %s1339_s21 = sphi %s1406_s21, %s1846_s21   ;;  %s1335_s20 = sphi %s1404_s20, %s1854_s20   ;;  %s1331_s19 = sphi %s1402_s19, %s1853_s19   ;;  %s1327_s18 = sphi %s1400_s18, %s1852_s18   ;;  %s1323_s17 = sphi %s1398_s17, %s1844_s17   ;;  %s1319_s16 = sphi %s1396_s16, %s1851_s16   ;;  %s1315_s15 = sphi %s1394_s15, %s1850_s15  }
   0xe   : > { %1815 = sst [smem:[#allocation14_spill]] %s1323_s17  ;;  %s844_s27 = sadd.s32 4294967294, %s1355_s25  }
   0xf   : > { %1816 = sst [smem:[#allocation15_spill]] %s1347_s23  ;;  %s32_s28 = sadd.s32 1, %s1347_s23 }
  0x10   : > { %1817 = sst [smem:[#allocation16_spill]] %s1351_s24  ;;  %s35_s29 = sadd.s32 1, %s1351_s24 }
  0x11   : > { %1818 = sst [smem:[#allocation17_spill]] %s1355_s25  ;;  %p33_p0 = scmp.ge.s32.totalorder %s32_s28, 3 }
  0x12   : > { %s68_s30 = sadd.s32 1, %s1335_s20  ;;  %p75_p1 = scmp.ne.s32.totalorder %s1335_s20, %s1331_s19 }
  0x13   : > { %p76_p2 = scmp.eq.s32.totalorder %s1355_s25, 0  ;;  %s1856_s28 = smov (%p33_p0, %s32_s28), 0 }
  0x14   : > { %1819 = sst [smem:[#allocation18_spill]] %s1856_s28  ;;  %s1858_s29 = smov (!%p33_p0, %s35_s29), %s1351_s24 }
  0x15   : > { %s65_s5 = ssub.s32 %s1347_s23, %s1856_s28  ;;  %p1462_p3 = por %p76_p2, %p75_p1 }
  0x16   : > { %p37_p4 = scmp.ge.s32.totalorder %s1858_s29, 2  ;;  %p66_p5 = scmp.eq.s32.totalorder %s65_s5, 0 }
  0x17   : > { %p81_p6 = scmp.ne.s32.totalorder %s1331_s19, %s1327_s18  ;;  %p82_p7 = scmp.eq.s32.totalorder %s1448_s26, 0 }
  0x18   : > { %s1860_s29 = smov (%p37_p4, %s1858_s29), 0  ;;  %s146_s10 = sadd.s32 1, %s1323_s17 }
  0x19   : > { %1821 = sst [smem:[#allocation19_spill]] %s1860_s29  ;;  %p1473_p8 = por %p82_p7, %p81_p6 }
  0x1a   : > { %s1471_s7 = scalar_select %p66_p5, %s1335_s20, %s68_s30  }
  0x1b   : > { %s1823_s8 = scalar_select %p1473_p8, 1, 0 }
  0x1c   : > { %1822 = sst [smem:[#allocation20_spill]] %s1471_s7  ;;  %s143_s9 = ssub.s32 %s1351_s24, %s1860_s29 }
  0x1d   : > { %p144_p9 = scmp.eq.s32.totalorder %s143_s9, 0  ;;  %p156_p10 = scmp.ne.s32.totalorder %s1323_s17, %s1319_s16 }
  0x1e   : > { %p157_p11 = scmp.eq.s32.totalorder %s1448_s26, 5  ;;  %p162_p13 = scmp.ne.s32.totalorder %s1319_s16, %s1315_s15 }
  0x1f   : > { %s1484_s11 = scalar_select %p144_p9, %s1323_s17, %s146_s10  }
  0x20   : > { %p1486_p12 = por %p157_p11, %p156_p10  ;;  %p163_p0 = scmp.eq.s32.totalorder %s844_s27, 5 }
  0x21   : > { %1824 = sst [smem:[#allocation21_spill]] %s1484_s11  ;;  %p1008_p1 = scmp.lt.s32.totalorder %s1355_s25, 6 }
  0x22   : > { %s1825_s12 = scalar_select %p1486_p12, 1, 0 }
  0x23   : > { %s1797_s13 = sand.u32 1, %s1335_s20   ;;  %p1494_p2 = por %p163_p0, %p162_p13 }
  0x24   : > { %s1500_s18 = sshll.u32 %s1797_s13, 6  ;;  %s1800_s30 = sshll.u32 %s1347_s23, 10 }
  0x25   : > { %s1826_s14 = scalar_select %p1494_p2, 1, 0 }
  0x26   : > { %p1505_p4 = pnand %p1008_p1, %p1462_p3  ;;  %s213_s9 = sand.u32 1, %s1355_s25  }
  0x27   : > { %1827 = sst [smem:[#allocation22_spill]] %s1826_s14  ;;  %s1829_s2 = sld [smem:[#allocation23_spill]] }
  0x28   : > { %s217_s13 = scalar_lea.vmem [#allocation6], %s1500_s18  ;;  %s1520_s6 = scalar_lea.sflag [#allocation7], %s213_s9 }
  0x29   : > { %s224_s28 = sshll.u32 %s217_s13, 4  ;;  %p1526_p5 = pneg %p1505_p4  ;;  %s1518_s28 = int_to_ptr.vmem [resolvable:$true] %s224_s28 }
  0x2d   : > { %s1515_s29 = scalar_lea.hbm %s1829_s2, %s1800_s30  ;;  %s1144_s30 = scalar_lea.hbm %s1829_s2, 3072 }
  0x2e   : > { %s1139_s24 = scalar_lea.hbm %s1515_s29, 1024  ;;  %p1145_p9 = scmp.lt.u32.totalorder %s1515_s29, %s1829_s2 }
  0x2f   : > { %p1140_p3 = scmp.ne.s32.totalorder %s1515_s29, %s1139_s24  ;;  %p1146_p10 = scmp.lt.u32.totalorder %s1144_s30, %s1139_s24 }
  0x30   : > { %p1148_p13 = scmp.lt.u32.totalorder %s1139_s24, %s1515_s29 }
  0x31   : > { %p1142_p6 = pnand %p1526_p5, %p1140_p3  ;;  %p1147_p11 = por %p1146_p10, %p1145_p9 }
  0x33   : > { %p1143_p7 = pneg %p1142_p6  ;;  %p1149_p0 = por %p1148_p13, %p1147_p11 }
  0x35   : > { %p1150_p1 = pnand %p1149_p0, %p1143_p7 }
  0x37   : > { %1153 = shalt.err (!%p1150_p1)
}
  0x38   : > { %s1154_s9 = scalar_lea.vmem %s1518_s28, 1024  ;;  %s1357_s27 = smov [#allocation6]  }
  0x39   : > { %p1155_p3 = scmp.ne.s32.totalorder %s1518_s28, %s1154_s9  ;;  %s1159_s10 = sshll.u32 %s1357_s27, 4  ;;  %s1160_s10 = int_to_ptr.vmem [resolvable:$false] %s1159_s10 }
  0x3a   : > { %s1161_s11 = scalar_lea.vmem %s1160_s10, 2048  ;;  %p1162_p12 = scmp.lt.s32.totalorder %s1518_s28, %s1160_s10 }
  0x3b   : > { %p1157_p6 = pnand %p1155_p3, %p1526_p5  ;;  %p1163_p8 = scmp.lt.s32.totalorder %s1161_s11, %s1154_s9 }
  0x3d   : > { %p1158_p2 = pneg %p1157_p6  ;;  %p1164_p9 = por %p1163_p8, %p1162_p12 }
  0x3f   : > { %p1165_p10 = pnand %p1164_p9, %p1158_p2 }
  0x41   : > { %1168 = shalt.err (!%p1165_p10)
}
  0x42   : > { %s1804_s24 = smov 64   ;;  %s1806_s30 = smov 4  }
  0x43   : > { %1000 = dma.hbm_to_vmem [thread:$0]  (!%p1505_p4), %s1515_s29, 1024, %s1518_s28, %s1520_s6, %s1804_s24, %s1804_s24, %s1806_s30  }
  0x44   : > { %s238_s13 = scalar_lea.vmem [#allocation8], %s1500_s18  ;;  %p855_p8 = scmp.ge.s32.totalorder %s1355_s25, 1 }
  0x45   : > { %s244_s9 = sshll.u32 %s238_s13, 4  ;;  %p252_p12 = scmp.lt.s32.totalorder %s1355_s25, 7  ;;  %s1555_s9 = int_to_ptr.vmem [resolvable:$true] %s244_s9 }
  0x46   : > { %s1832_s10 = sshll.u32 %s1347_s23, 10  ;;  %s196_s28 = scalar_lea.vmem [#allocation3], %s1500_s18 }
  0x47   : > { %p1558_p2 = pnand %p855_p8, %p252_p12  ;;  %s1567_s17 = scalar_lea.hbm %s1792_s1, %s1832_s10 }
  0x48   : > { %s203_s29 = sshll.u32 %s196_s28, 4  ;;  %s854_s13 = sshll.u32 %s1347_s23, 6  ;;  %s1571_s29 = int_to_ptr.vmem [resolvable:$true] %s203_s29 }
  0x49   : > { %s1831_s27 = scalar_select %p1558_p2, 1, 0 }
  0x4a   : > { %s1576_s14 = scalar_lea.hbm %s1794_s3, %s854_s13  ;;  %s1833_s15 = sand.u32 1, %s1335_s20  }
  0x4b   : > { %s1580_s25 = scalar_lea.sflag [#allocation4], %s1833_s15  ;;  %s1169_s2 = scalar_lea.hbm %s1567_s17, 1024 }
  0x4c   : > { %p1170_p7 = scmp.ne.s32.totalorder %s1567_s17, %s1169_s2  ;;  %s1174_s18 = scalar_lea.hbm %s1792_s1, 3072 }
  0x4d   : > { %p1175_p0 = scmp.lt.u32.totalorder %s1567_s17, %s1792_s1  ;;  %p1176_p1 = scmp.lt.u32.totalorder %s1174_s18, %s1169_s2 }
  0x4e   : > { %p1172_p11 = pnand %p1170_p7, %p1526_p5  ;;  %p1178_p6 = scmp.lt.u32.totalorder %s1169_s2, %s1567_s17 }
  0x4f   : > { %p1177_p3 = por %p1176_p1, %p1175_p0 }
  0x50   : > { %p1173_p13 = pneg %p1172_p11 }
  0x51   : > { %p1179_p9 = por %p1178_p6, %p1177_p3 }
  0x53   : > { %p1180_p10 = pnand %p1179_p9, %p1173_p13 }
  0x55   : > { %1183 = shalt.err (!%p1180_p10)
}
  0x56   : > { %s1184_s15 = scalar_lea.vmem %s1571_s29, 1024  ;;  %s1360_s24 = smov [#allocation3]  }
  0x57   : > { %p1185_p8 = scmp.ne.s32.totalorder %s1571_s29, %s1184_s15  ;;  %s1189_s30 = sshll.u32 %s1360_s24, 4  ;;  %s1190_s30 = int_to_ptr.vmem [resolvable:$false] %s1189_s30 }
  0x58   : > { %s1191_s23 = scalar_lea.vmem %s1190_s30, 2048  ;;  %p1192_p11 = scmp.lt.s32.totalorder %s1571_s29, %s1190_s30 }
  0x59   : > { %p1187_p12 = pnand %p1185_p8, %p1526_p5  ;;  %p1193_p2 = scmp.lt.s32.totalorder %s1191_s23, %s1184_s15 }
  0x5b   : > { %p1188_p7 = pneg %p1187_p12  ;;  %p1194_p0 = por %p1193_p2, %p1192_p11 }
  0x5d   : > { %p1195_p1 = pnand %p1194_p0, %p1188_p7 }
  0x5f   : > { %1198 = shalt.err (!%p1195_p1)
}
  0x60   : > { %s1834_s13 = smov 4   ;;  %s1835_s2 = smov 64  }
  0x61   : > { %997 = dma.hbm_to_vmem [thread:$0]  (!%p1505_p4), %s1567_s17, 1024, %s1571_s29, %s1580_s25, %s1835_s2, %s1835_s2, %s1834_s13  }
  0x62   : > { %s1199_s10 = scalar_lea.hbm %s1576_s14, 1024  ;;  %s1204_s28 = scalar_lea.hbm %s1794_s3, 3072 }
  0x63   : > { %p1200_p13 = scmp.ne.s32.totalorder %s1576_s14, %s1199_s10  ;;  %p1205_p6 = scmp.lt.u32.totalorder %s1576_s14, %s1794_s3 }
  0x64   : > { %p1206_p9 = scmp.lt.u32.totalorder %s1204_s28, %s1199_s10  ;;  %p1208_p8 = scmp.lt.u32.totalorder %s1199_s10, %s1576_s14 }
  0x65   : > { %p1202_p2 = pnand %p1200_p13, %p1526_p5 }
  0x66   : > { %p1207_p10 = por %p1206_p9, %p1205_p6 }
  0x67   : > { %p1203_p3 = pneg %p1202_p2 }
  0x68   : > { %p1209_p12 = por %p1208_p8, %p1207_p10 }
  0x6a   : > { %p1210_p7 = pnand %p1209_p12, %p1203_p3 }
  0x6c   : > { %1213 = shalt.err (!%p1210_p7)
}
  0x6d   : > { %s1214_s17 = scalar_lea.vmem %s1555_s9, 1024  ;;  %s1361_s25 = smov [#allocation8]  }
  0x6e   : > { %p1215_p11 = scmp.ne.s32.totalorder %s1555_s9, %s1214_s17  ;;  %s1219_s29 = sshll.u32 %s1361_s25, 4  ;;  %s1220_s29 = int_to_ptr.vmem [resolvable:$false] %s1219_s29 }
  0x6f   : > { %s1221_s30 = scalar_lea.vmem %s1220_s29, 2048  ;;  %p1222_p13 = scmp.lt.s32.totalorder %s1555_s9, %s1220_s29 }
  0x70   : > { %p1217_p0 = pnand %p1215_p11, %p1526_p5  ;;  %p1223_p2 = scmp.lt.s32.totalorder %s1221_s30, %s1214_s17 }
  0x72   : > { %p1218_p1 = pneg %p1217_p0  ;;  %p1224_p6 = por %p1223_p2, %p1222_p13 }
  0x74   : > { %p1225_p9 = pnand %p1224_p6, %p1218_p1 }
  0x76   : > { %1228 = shalt.err (!%p1225_p9)
}
  0x77   : > { %s1362_s23 = smov 192   ;;  %p1836_p5 = scmp.ne.s32.totalorder %s1831_s27, 0 }
  0x78   : > { %1003 = dma.hbm_to_vmem [thread:$0]  (!%p1505_p4), %s1576_s14, 1024, %s1555_s9, %s1520_s6, %s1362_s23, %s1835_s2, %s1834_s13  }
  0x79   : > { %256 = sbr.rel (%p1836_p5) target bundleno = 706 (0x2c2), region = 36  ;;  %s258_s7 = sand.u32 (!%p1836_p5), 1, %s1331_s19  }
  0x7a   : > { %s856_s10 = sshll.u32 (!%p1836_p5), %s258_s7, 6  ;;  %s259_s11 = scalar_lea.sflag (!%p1836_p5), [#allocation4], %s258_s7 }
  0x7b   : > { %s1634_s18 = scalar_lea.vmem (!%p1836_p5), [#allocation3], %s856_s10  ;;  %p1837_p3 = scmp.ne.s32.totalorder (!%p1836_p5), %s1823_s8, 0 }
  0x80   : > { %1302 = dma.done.wait (%p1837_p3), %s259_s11, 1024  }
  0x81   : > { %1304 = vsyncadd (%p1837_p3), %s259_s11, 4294966272  ;;  %s267_s5 = sand.u32 1, %s1448_s26   ;;  %s1641_s14 = scalar_lea.vmem [#allocation6], %s856_s10 }
  0x82   : > { %s268_s28 = scalar_lea.sflag [#allocation7], %s267_s5 }
  0x83   : > { %1306 = dma.done.wait (%p1837_p3), %s268_s28, 2048  }
  0x84   : > { %1308 = vsyncadd (%p1837_p3), %s268_s28, 4294965248  ;;  %s317_s6 = sand.u32 1, %s1319_s16   ;;  %s860_s27 = sshll.u32 %s1343_s22, 1 }
  0x85   : > { %s859_s9 = sshll.u32 %s317_s6, 4  ;;  %p321_p4 = scmp.lt.s32.totalorder %s860_s27, 3 }
  0x86   : > { %s1656_s24 = scalar_lea.vmem [#allocation8], %s856_s10  ;;  %s1658_s17 = scalar_lea.vmem [#allocation9], %s859_s9 }
  0x87   : > { %s1862_s27 = smov (!%p321_p4, %s860_s27), 3  ;;  %p862_p10 = scmp.ne.s32.totalorder %s1339_s21, 0 }
  0x88   : > { %s861_s13 = sshll.u32 %s1862_s27, 2  ;;  %v1363_v0 = vmov (!%p862_p10), 0.0  }
  0x89   : > { %s1654_s15 = scalar_lea.vmem %s1791_s0, %s861_s13  ;;  %333 = sbr.rel (%p862_p10) target bundleno = 144 (0x90), region = 52  ;;  %334 = vst [vmem:[#allocation2] sm:$0xff] (!%p862_p10), %v1363_v0  ;;  %335 = vst [vmem:[#allocation2 + $0x8] sm:$0xff] (!%p862_p10), %v1363_v0 }
  0x90 PF: > { %v1106_v1 = vld [vmem:[%s1634_s18] sm:$0xff]   ;;  %v1364_v2 = vmov 0.0   ;;  %vm1365_vm0 = vmmov 0   ;;  %v1107_v4 = vld [vmem:[%s1634_s18 + $0x8] sm:$0xff]   ;;  %v1108_v6 = vld [vmem:[%s1634_s18 + $0x10] sm:$0xff]   ;;  %p890_p8 = scmp.ne.s32.totalorder %s1339_s21, 2 }
  0x91   : > { %926 = vmatprep.subr.bf16.mxu0 %v1364_v2  ;;  %946 = vmatprep.subr.bf16.mxu1 %v1364_v2  ;;  %v1110_v3 = vld [vmem:[%s1641_s14] sm:$0xff]   ;;  %v1112_v5 = vld [vmem:[%s1641_s14 + $0x8] sm:$0xff]   ;;  %v1114_v7 = vld [vmem:[%s1641_s14 + $0x10] sm:$0xff]  }
  0x92   : > { %927 = vmatpush3.bf16.xpose.msra.mxu0 %v1106_v1  ;;  %942 = vmatprep.mubr.msk.bf16.mxu0 %vm1365_vm0, %v1364_v2  ;;  %v1109_v8 = vld [vmem:[%s1634_s18 + $0x18] sm:$0xff]   ;;  %v1111_v10 = vld [vmem:[%s1634_s18 + $0x20] sm:$0xff]   ;;  %v1113_v12 = vld [vmem:[%s1634_s18 + $0x28] sm:$0xff]  }
  0x93   : > { %928 = vmatprep.subr.bf16.mxu0 %v1364_v2  ;;  %962 = vmatprep.mubr.msk.bf16.mxu1 %vm1365_vm0, %v1364_v2  ;;  %v1116_v9 = vld [vmem:[%s1641_s14 + $0x18] sm:$0xff]   ;;  %v1118_v11 = vld [vmem:[%s1641_s14 + $0x20] sm:$0xff]   ;;  %v1120_v13 = vld [vmem:[%s1641_s14 + $0x28] sm:$0xff]  }
  0x94   : > { %947 = vmatpush3.bf16.xpose.msra.mxu1 %v1110_v3  ;;  %v1115_v14 = vld [vmem:[%s1634_s18 + $0x30] sm:$0xff]   ;;  %v1117_v16 = vld [vmem:[%s1634_s18 + $0x38] sm:$0xff]   ;;  %v1123_v19 = vld [vmem:[%s1656_s24] sm:$0xff]  }
  0x95   : > { %948 = vmatprep.subr.bf16.mxu1 %v1364_v2  ;;  %v1121_v15 = vld [vmem:[%s1641_s14 + $0x30] sm:$0xff]   ;;  %v1122_v17 = vld [vmem:[%s1641_s14 + $0x38] sm:$0xff]   ;;  %v1124_v20 = vld [vmem:[%s1656_s24 + $0x8] sm:$0xff]  }
  0x96   : > { %v1119_v18 = vld [vmem:[%s1654_s15] sm:$0xff]   ;;  %v1126_v22 = vld [vmem:[%s1656_s24 + $0x18] sm:$0xff]   ;;  %v1127_v23 = vld [vmem:[%s1656_s24 + $0x20] sm:$0xff]  }
  0x97   : > { %v1125_v21 = vld [vmem:[%s1656_s24 + $0x10] sm:$0xff]   ;;  %v1128_v24 = vld [vmem:[%s1656_s24 + $0x28] sm:$0xff]   ;;  %v1130_v26 = vld [vmem:[%s1656_s24 + $0x38] sm:$0xff]  }
  0x98   : > { %v1129_v25 = vld [vmem:[%s1656_s24 + $0x30] sm:$0xff]   ;;  %v571_v50 = vld [vmem:[#allocation2 + $0x8] sm:$0xff] }
  0x99   : > { %v570_v48 = vld [vmem:[#allocation2] sm:$0xff] }
  0x9a   : > { %929 = vmatpush3.bf16.xpose.msra.mxu0 %v1107_v4 }
  0x9b   : > { %930 = vmatprep.subr.bf16.mxu0 %v1364_v2 }
  0x9c   : > { %949 = vmatpush3.bf16.xpose.msra.mxu1 %v1112_v5 }
  0x9d   : > { %950 = vmatprep.subr.bf16.mxu1 %v1364_v2 }
  0xa2   : > { %931 = vmatpush3.bf16.xpose.msra.mxu0 %v1108_v6 }
  0xa3   : > { %932 = vmatprep.subr.bf16.mxu0 %v1364_v2 }
  0xa4   : > { %951 = vmatpush3.bf16.xpose.msra.mxu1 %v1114_v7 }
  0xa5   : > { %952 = vmatprep.subr.bf16.mxu1 %v1364_v2 }
  0xaa   : > { %933 = vmatpush3.bf16.xpose.msra.mxu0 %v1109_v8 }
  0xab   : > { %934 = vmatprep.subr.bf16.mxu0 %v1364_v2 }
  0xac   : > { %953 = vmatpush3.bf16.xpose.msra.mxu1 %v1116_v9 }
  0xad   : > { %954 = vmatprep.subr.bf16.mxu1 %v1364_v2 }
  0xb2   : > { %935 = vmatpush3.bf16.xpose.msra.mxu0 %v1111_v10 }
  0xb3   : > { %936 = vmatprep.subr.bf16.mxu0 %v1364_v2 }
  0xb4   : > { %955 = vmatpush3.bf16.xpose.msra.mxu1 %v1118_v11 }
  0xb5   : > { %956 = vmatprep.subr.bf16.mxu1 %v1364_v2 }
  0xba   : > { %937 = vmatpush3.bf16.xpose.msra.mxu0 %v1113_v12 }
  0xbb   : > { %938 = vmatprep.subr.bf16.mxu0 %v1364_v2 }
  0xbc   : > { %957 = vmatpush3.bf16.xpose.msra.mxu1 %v1120_v13 }
  0xbd   : > { %958 = vmatprep.subr.bf16.mxu1 %v1364_v2 }
  0xc2   : > { %939 = vmatpush3.bf16.xpose.msra.mxu0 %v1115_v14 }
  0xc3   : > { %940 = vmatprep.subr.bf16.mxu0 %v1364_v2 }
  0xc4   : > { %959 = vmatpush3.bf16.xpose.msra.mxu1 %v1121_v15 }
  0xc5   : > { %960 = vmatprep.subr.bf16.mxu1 %v1364_v2 }
  0xca   : > { %941 = vmatpush3.bf16.xpose.msra.mxu0 %v1117_v16 }
  0xcb   : > { %966 = vmatprep.subr.bf16.mxu0 %v1364_v2 }
  0xcc   : > { %961 = vmatpush3.bf16.xpose.msra.mxu1 %v1122_v17 }
  0xd1   : > { %943 = vmatmul.mubr.bf16.vlgmr.msra.gmra.mrb[0].mxu0 %v1119_v18 }
  0xd2   : > { %967 = vmatpush3.bf16.xpose.msra.mxu0 %v1123_v19  ;;  %982 = vmatprep.mubr.msk.bf16.mxu0 %vm1365_vm0, %v1364_v2 }
  0xd3   : > { %968 = vmatprep.subr.bf16.mxu0 %v1364_v2  ;;  %963 = vmatmul.mubr.bf16.vlgmr.msra.gmra.mrb[0].mxu1 %v1119_v18 }
  0xda   : > { %969 = vmatpush3.bf16.xpose.msra.mxu0 %v1124_v20 }
  0xdb   : > { %970 = vmatprep.subr.bf16.mxu0 %v1364_v2 }
  0xe2   : > { %971 = vmatpush3.bf16.xpose.msra.mxu0 %v1125_v21 }
  0xe3   : > { %972 = vmatprep.subr.bf16.mxu0 %v1364_v2 }
  0xea   : > { %973 = vmatpush3.bf16.xpose.msra.mxu0 %v1126_v22 }
  0xeb   : > { %974 = vmatprep.subr.bf16.mxu0 %v1364_v2 }
  0xf2   : > { %975 = vmatpush3.bf16.xpose.msra.mxu0 %v1127_v23 }
  0xf3   : > { %976 = vmatprep.subr.bf16.mxu0 %v1364_v2 }
  0xfa   : > { %977 = vmatpush3.bf16.xpose.msra.mxu0 %v1128_v24 }
  0xfb   : > { %978 = vmatprep.subr.bf16.mxu0 %v1364_v2 }
 0x102   : > { %979 = vmatpush3.bf16.xpose.msra.mxu0 %v1129_v25 }
 0x103   : > { %980 = vmatprep.subr.bf16.mxu0 %v1364_v2 }
 0x10a   : > { %981 = vmatpush3.bf16.xpose.msra.mxu0 %v1130_v26 }
 0x1a4   : > { %v442_v27 = vpop.f32.mrb[0].mxu0 }
 0x1a5   : > { %v880_v28 = vmul.f32 -1.442695, %v442_v27  ;;  %v944_v29 = vpop.f32.mrb[1].mxu0 }
 0x1a6   : > { %v445_v30 = vpop.f32.mrb[2].mxu0  ;;  %v547_v33 = vpop.f32.mrb[0].mxu1 }
 0x1a7   : > { %1131 = vpow2.f32 %v880_v28  ;;  %v881_v31 = vmul.f32 -1.442695, %v445_v30  ;;  %v945_v32 = vpop.f32.mrb[3].mxu0  ;;  %v964_v34 = vpop.f32.mrb[1].mxu1 }
 0x1a8   : > { %v550_v35 = vpop.f32.mrb[2].mxu1 }
 0x1a9   : > { %1133 = vpow2.f32 %v881_v31  ;;  %v965_v36 = vpop.f32.mrb[3].mxu1 }
 0x1b1   : > { %v1132_v37 = vpop.eup %1131 }
 0x1b2   : > { %v560_v38 = vadd.f32 1.0, %v1132_v37 }
 0x1b3   : > { %v1134_v39 = vpop.eup %1133 }
 0x1b4   : > { %1135 = vrcp.f32 %v560_v38  ;;  %v561_v40 = vadd.f32 1.0, %v1134_v39 }
 0x1b6   : > { %1137 = vrcp.f32 %v561_v40 }
 0x1be   : > { %v1136_v41 = vpop.eup %1135 }
 0x1bf   : > { %v566_v42 = vmul.f32 %v1136_v41, %v442_v27 }
 0x1c0   : > { %v1138_v43 = vpop.eup %1137 }
 0x1c1   : > { %v567_v44 = vmul.f32 %v1138_v43, %v445_v30  ;;  %v568_v45 = vmul.f32 %v566_v42, %v547_v33 }
 0x1c3   : > { %v569_v46 = vmul.f32 %v567_v44, %v550_v35 }
 0x1c5   : > { %v572_v47 = vpack.c.bf16 %v569_v46, %v568_v45 }
 0x1c7   : > { %983 = vmatmul.mubr.bf16.vlgmr.msra.gmra.mrb[4].mxu0 %v572_v47 }
 0x299   : > { %685 = sbr.rel (%p890_p8) target bundleno = 680 (0x2a8), region = 56 }
 0x29a   : > { %v671_v49 = vpop.f32.mrb[4].mxu0 }
 0x29b   : > { %v678_v51 = vadd.f32 %v671_v49, %v570_v48  ;;  %v984_v52 = vpop.f32.mrb[5].mxu0 }
 0x29c   : > { %v674_v53 = vpop.f32.mrb[6].mxu0 }
 0x29d   : > { %680 = vst [vmem:[#allocation2] sm:$0xff] %v678_v51  ;;  %v679_v54 = vadd.f32 %v674_v53, %v571_v50  ;;  %v985_v55 = vpop.f32.mrb[7].mxu0 }
 0x29f   : > { %681 = vst [vmem:[#allocation2 + $0x8] sm:$0xff] %v679_v54 }
 0x2a4   : > { %v686_v56 = vld [vmem:[#allocation2] sm:$0xff] }
 0x2a5   : > { %688 = vst [vmem:[%s1658_s17] sm:$0xff] %v686_v56 }
 0x2a6   : > { %v687_v57 = vld [vmem:[#allocation2 + $0x8] sm:$0xff] }
 0x2a7   : > { %689 = vst [vmem:[%s1658_s17 + $0x8] sm:$0xff] %v687_v57 }
 0x2a8 PF: > { %s898_s8 = sshll.u32 %s1343_s22, 8  ;;  %s704_s23 = sshll.u32 %s1658_s17, 4  ;;  %s1726_s23 = int_to_ptr.vmem [resolvable:$true] %s704_s23 }
 0x2a9   : > { %s1723_s30 = scalar_lea.hbm %s1795_s4, %s898_s8  ;;  %s1730_s21 = scalar_lea.sflag [#allocation5], %s317_s6 }
 0x2aa   : > { %s1229_s7 = scalar_lea.vmem %s1726_s23, 256  ;;  %p1838_p7 = scmp.ne.s32.totalorder %s1825_s12, 0 }
 0x2ab   : > { %p1230_p12 = scmp.ne.s32.totalorder %s1726_s23, %s1229_s7  ;;  %s1366_s22 = smov [#allocation9]  }
 0x2ac   : > { %s1233_s10 = sshll.u32 %s1366_s22, 4  ;;  %s1234_s10 = int_to_ptr.vmem [resolvable:$false] %s1233_s10 }
 0x2ad   : > { %p1231_p11 = pnand %p1230_p12, %p1838_p7  ;;  %s1235_s11 = scalar_lea.vmem %s1234_s10, 512 }
 0x2ae   : > { %p1236_p1 = scmp.lt.s32.totalorder %s1726_s23, %s1234_s10  ;;  %p1237_p13 = scmp.lt.s32.totalorder %s1235_s11, %s1229_s7 }
 0x2af   : > { %p1232_p0 = pneg %p1231_p11 }
 0x2b0   : > { %p1238_p2 = por %p1237_p13, %p1236_p1 }
 0x2b2   : > { %p1239_p6 = pnand %p1238_p2, %p1232_p0 }
 0x2b4   : > { %1242 = shalt.err (!%p1239_p6)
}
 0x2b5   : > { %s1243_s18 = scalar_lea.hbm %s1723_s30, 256  ;;  %s1247_s14 = scalar_lea.hbm %s1795_s4, 512 }
 0x2b6   : > { %p1244_p9 = scmp.ne.s32.totalorder %s1723_s30, %s1243_s18  ;;  %p1248_p4 = scmp.lt.u32.totalorder %s1723_s30, %s1795_s4 }
 0x2b7   : > { %p1249_p10 = scmp.lt.u32.totalorder %s1247_s14, %s1243_s18  ;;  %p1251_p12 = scmp.lt.u32.totalorder %s1243_s18, %s1723_s30 }
 0x2b8   : > { %p1245_p5 = pnand %p1244_p9, %p1838_p7 }
 0x2b9   : > { %p1250_p8 = por %p1249_p10, %p1248_p4 }
 0x2ba   : > { %p1246_p3 = pneg %p1245_p5 }
 0x2bb   : > { %p1252_p11 = por %p1251_p12, %p1250_p8 }
 0x2bd   : > { %p1253_p0 = pnand %p1252_p11, %p1246_p3 }
 0x2bf   : > { %1256 = shalt.err (!%p1253_p0)
}
 0x2c0   : > { %s1367_s27 = smov 128   ;;  %s1368_s13 = smov 8  }
 0x2c1   : > { %992 = dma.vmem_to_hbm [thread:$0]  (%p1838_p7), %s1726_s23, 256, %s1723_s30, %s1730_s21, %s1367_s27, %s1367_s27, %s1368_s13  }
 0x2c2 PF: > { %s1839_s2 = sld [smem:[#allocation17_spill]]  ;;  %s1840_s26 = sld [smem:[#allocation13_spill]] }
 0x2c3   : > { %s1841_s15 = sld [smem:[#allocation22_spill]] }
 0x2c8   : > { %p1009_p1 = scmp.ge.s32.totalorder %s1839_s2, 2  ;;  %s719_s24 = sand.u32 1, %s1840_s26  }
 0x2c9   : > { %p1842_p13 = scmp.ne.s32.totalorder %s1841_s15, 0  ;;  %s720_s17 = scalar_lea.sflag [#allocation5], %s719_s24 }
 0x2cb   : > { %p1005_p2 = pnand %p1009_p1, %p1842_p13 }
 0x2cd   : > { %1310 = dma.done.wait (!%p1005_p2), %s720_s17, 256  }
 0x2ce   : > { %1312 = vsyncadd (!%p1005_p2), %s720_s17, 4294967040  ;;  %s23_s25 = sadd.s32 1, %s1839_s2   ;;  %s1843_s8 = sld [smem:[#allocation14_spill]] }
 0x2cf   : > { %p20_p6 = scmp.ge.s32.totalorder %s23_s25, 8   ;;  %s1844_s17 = sld [smem:[#allocation21_spill]] }
 0x2d0   : > { %s1845_s12 = sld [smem:[#allocation20_spill]]  ;;  %s1846_s21 = sld [smem:[#allocation15_spill]] }
 0x2d1   : > { %s1847_s22 = sld [smem:[#allocation16_spill]]  ;;  %s1848_s23 = sld [smem:[#allocation18_spill]] }
 0x2d2   : > { %s1849_s24 = sld [smem:[#allocation19_spill]]  ;;  %s1850_s15 = smov %s1319_s16 }
 0x2d3   : > { %s1852_s18 = smov %s1331_s19  ;;  %s1853_s19 = smov %s1335_s20 }
 0x2d4   : > { %s1851_s16 = smov %s1843_s8  ;;  %22 = sbr.rel (!%p20_p6) target bundleno = 13 (0xd), region = 116 }
 0x2d6   : > { %s1854_s20 = smov %s1845_s12 }
 0x2db   :  { %725 = vsyncpa [#allocation4], 1 }
 0x2dc   :  { %727 = vsyncpa [#allocation4 + $0x1], 1 }
 0x2dd   :  { %728 = vsyncpa [#allocation7], 1 }
 0x2de   :  { %730 = vsyncpa [#allocation7 + $0x1], 1 }
 0x2df   :  { %731 = vsyncpa [#allocation5], 1 }
 0x2e0   :  { %733 = vsyncpa [#allocation5 + $0x1], 1 }

</bundles_post_ra>
